<compile_context>
chip_gen: v6e
topology: v6e:2x2x1
jax: 0.10.0
libtpu: 0.0.40
codegen_flags: <defaults>
</compile_context>

<pallas_src>
import functools

import jax
import jax.numpy as jnp
from jax import lax
from jax.experimental import pallas as pl
from jax.experimental.pallas import tpu as pltpu


def _round_up(x: int, m: int) -> int:
    return ((x + m - 1) // m) * m


def _choose_tiling(T, mask_max_length, rows, dtype_bytes, min_block_bytes):
    """Pick (t_blk, T_pad).

    Smallest lane-aligned (multiple-of-128) time tile that
      (a) is >= round_up(mask_max_length, 128) so one mask spills into at most
          one neighbouring block,
      (b) meets a per-block byte floor so per-grid-step overhead (~0.35us)
          stays hidden behind the block DMA,
      (c) keeps ~4x block bytes (double-buffered input + aliased output) far
          below v7x's 64 MiB per-core VMEM.
    Small inputs collapse to a single full-time block (no padding needed).
    """
    if T < 256 or rows * T * dtype_bytes <= min_block_bytes:
        return T, T
    t_blk = max(128, _round_up(mask_max_length, 128))
    while rows * t_blk * dtype_bytes < min_block_bytes and t_blk * 2 <= T:
        t_blk *= 2
    while 4 * rows * t_blk * dtype_bytes > (24 << 20) and t_blk > 128:
        t_blk //= 2
    return t_blk, _round_up(T, t_blk)


def _masking_kernel(apply_ref, napp_ref, start_ref, len_ref, blk_ref,
                    x_ref, o_ref, *, num_masks, steps_per_batch):
    """One grid step == one (batch element, candidate time block).

    Every visitor of a block applies the *union* of all active masks of its
    batch element restricted to that block, so duplicate / concurrent visitors
    (dedup'd steps, cross-core revisits on v7x, torn DMAs on the aliased
    buffer) write bitwise-identical data — ordering never matters.

    apply_ref : (B,)            int32 SMEM -- bernoulli(p) flag per batch element
    napp_ref  : (B,)            int32 SMEM -- number of masks to apply (1..M)
    start_ref : (B*M,)          int32 SMEM -- mask start indices (time axis)
    len_ref   : (B*M,)          int32 SMEM -- mask lengths (<= mask_max_length)
    blk_ref   : (B*steps,)      int32 SMEM -- candidate time-block index per step
    x_ref     : (C*F, T_blk)    VMEM       -- batch dim squeezed, (C,F) folded
    o_ref     : (C*F, T_blk)    VMEM       -- aliases x in HBM
    """
    b = pl.program_id(0)
    s_id = pl.program_id(1)
    _, t_blk = x_ref.shape

    blk = blk_ref[b * steps_per_batch + s_id]
    t0 = blk * t_blk                      # global time offset of this block

    applied = apply_ref[b] > 0
    n_app = napp_ref[b]

    t_idx = t0 + lax.broadcasted_iota(jnp.int32, (1, t_blk), 1)
    in_mask = jnp.zeros((1, t_blk), dtype=jnp.bool_)
    far = jnp.int32(0x3FFFFFFF)           # pushes inactive masks out of range
    for m in range(num_masks):            # num_masks is small & static
        s = start_ref[b * num_masks + m]
        l = len_ref[b * num_masks + m]
        active = jnp.logical_and(applied, m < n_app)
        lo = jnp.where(active, s, far)
        hi = jnp.where(active, s + l, far)
        in_mask = jnp.logical_or(in_mask,
                                 jnp.logical_and(t_idx >= lo, t_idx < hi))

    x = x_ref[...]
    o_ref[...] = jnp.where(in_mask, jnp.zeros((), x.dtype), x)


def custom_masking(x, apply_flags, n_applies, starts, lengths, *,
                   mask_max_length, min_block_bytes=1 << 20):
    """Apply per-batch time masking.  All randomness lives in the int32 inputs.

    For true in-place behaviour (never-visited blocks don't move through HBM),
    wrap the call in jax.jit with donate_argnums=(0,) so the x->output alias
    is honored without a defensive copy.
    """
    B, C, F, T = x.shape
    M = starts.shape[1]
    rows = C * F
    dtype_bytes = jnp.dtype(x.dtype).itemsize

    t_blk, T_pad = _choose_tiling(T, mask_max_length, rows, dtype_bytes,
                                  min_block_bytes)
    n_blk = T_pad // t_blk

    # Fold (C, F) into one sublane axis: denser vld/vst tiles and a single
    # broadcastable time mask.  A contiguous reshape is free layout plumbing.
    x_in = x.reshape(B, rows, T)
    if T_pad != T:
        # TODO(synk): padding re-materializes x; a ragged last block via manual
        # DMA would preserve true in-place semantics for non-128-multiple T.
        x_in = jnp.pad(x_in, ((0, 0), (0, 0), (0, T_pad - T)))

    # 1-D int32 SMEM tables (2-D SMEM pads to [ceil(R/8)*8, ceil(C/128)*128]).
    apply_i = apply_flags.astype(jnp.int32).reshape(B)
    napp_i = n_applies.astype(jnp.int32).reshape(B)
    starts_i = starts.astype(jnp.int32).reshape(B * M)
    lens_i = lengths.astype(jnp.int32).reshape(B * M)

    starts2 = starts.astype(jnp.int32)
    lens2 = lengths.astype(jnp.int32)

    if n_blk == 1:
        # Single time block: one visit per batch element applies the whole union.
        steps_per_batch = 1
        blk_tbl = jnp.zeros((B,), jnp.int32)
    else:
        steps_per_batch = 2 * M
        blk0 = jnp.clip(starts2 // t_blk, 0, n_blk - 1)                  # (B, M)
        # Only visit the neighbouring block when the mask actually spills into it.
        spill = (starts2 % t_blk) + lens2 > t_blk
        blk1 = jnp.where(spill, jnp.minimum(blk0 + 1, n_blk - 1), blk0)  # (B, M)
        # Park inactive masks (apply==0 or m >= n_applies) on an already-listed
        # block so their DMAs dedupe away.
        active = (apply_i[:, None] > 0) & (
            jnp.arange(M, dtype=jnp.int32)[None, :] < napp_i[:, None])
        anchor = blk0[:, :1]
        blk0 = jnp.where(active, blk0, anchor)
        blk1 = jnp.where(active, blk1, anchor)
        # Sort per batch so duplicates land on consecutive grid steps: the
        # pipeline elides fetch/writeback when consecutive steps resolve to the
        # same block index.  Safe because every visitor writes the full union.
        cand = jnp.sort(jnp.concatenate([blk0, blk1], axis=-1), axis=-1)
        blk_tbl = cand.reshape(B * steps_per_batch)

    def block_map(b, s, apply_r, napp_r, start_r, len_r, blk_r):
        # Data-dependent block index from SMEM (scalar prefetch).
        return (b, 0, blk_r[b * steps_per_batch + s])

    kernel = functools.partial(_masking_kernel, num_masks=M,
                               steps_per_batch=steps_per_batch)

    grid_spec = pltpu.PrefetchScalarGridSpec(
        num_scalar_prefetch=5,
        grid=(B, steps_per_batch),
        in_specs=[pl.BlockSpec((None, rows, t_blk), block_map)],
        out_specs=pl.BlockSpec((None, rows, t_blk), block_map),
    )

    block_bytes = rows * t_blk * dtype_bytes
    vmem_limit = int(min(48 << 20, max(16 << 20, 6 * block_bytes)))

    # v7x has 2 TensorCores: ensure a >1-element axis is "parallel".  The
    # idempotent union write makes cross-core revisits of a block safe.
    semantics = ("parallel", "arbitrary") if B > 1 else ("arbitrary", "parallel")

    out = pl.pallas_call(
        kernel,
        out_shape=jax.ShapeDtypeStruct((B, rows, T_pad), x.dtype),
        grid_spec=grid_spec,
        # x_in is operand 5 (after the 5 scalar-prefetch operands); aliasing it
        # onto the output means blocks the grid never visits stay in place.
        input_output_aliases={5: 0},
        compiler_params=pltpu.CompilerParams(
            dimension_semantics=semantics,
            vmem_limit_bytes=vmem_limit,
        ),
    )(apply_i, napp_i, starts_i, lens_i, blk_tbl, x_in)

    if T_pad != T:
        out = out[:, :, :T]
    return out.reshape(B, C, F, T)


def _reference(x, apply_flags, n_applies, starts, lengths):
    """Pure-JAX reference of the same masking semantics."""
    B, C, F, T = x.shape
    M = starts.shape[1]
    t_idx = jnp.arange(T, dtype=jnp.int32)[None, :]
    mask = jnp.zeros((B, T), dtype=bool)
    for m in range(M):
        s = starts[:, m][:, None]
        l = lengths[:, m][:, None]
        active = ((apply_flags > 0) & (m < n_applies))[:, None]
        mask = mask | ((t_idx >= s) & (t_idx < s + l) & active)
    return jnp.where(mask[:, None, None, :], jnp.zeros((), x.dtype), x)


if __name__ == "__main__":
    # TODO(synk): the base class leaves self.mask_module = None; we concretize
    # it as torchaudio-style TimeMasking (zero a contiguous time span).  The
    # module's host-side np.random draws are mirrored by explicit int32 inputs.
    masked_fn = jax.jit(
        custom_masking,
        static_argnames=("mask_max_length", "min_block_bytes"),
        donate_argnums=(0,),   # honor input_output_aliases without a copy
    )

    def run_case(key, B, C, F, T, mask_max_length, mask_max_masks, p,
                 min_block_bytes=1 << 20):
        kx, ka, kn, ks, kl = jax.random.split(key, 5)
        x = jax.random.normal(kx, (B, C, F, T), dtype=jnp.float32)
        # Host-side random decisions (mirror of np.random.binomial / randint).
        apply_flags = (jax.random.uniform(ka, (B,)) < p).astype(jnp.int32)
        n_applies = jax.random.randint(kn, (B,), 1, mask_max_masks + 1,
                                       dtype=jnp.int32)
        starts = jax.random.randint(ks, (B, mask_max_masks), 0, T,
                                    dtype=jnp.int32)
        lengths = jax.random.randint(kl, (B, mask_max_masks), 1,
                                     mask_max_length + 1, dtype=jnp.int32)

        # Reference first: x is donated to the kernel call below.
        ref = jax.block_until_ready(
            _reference(x, apply_flags, n_applies, starts, lengths))
        out = masked_fn(x, apply_flags, n_applies, starts, lengths,
                        mask_max_length=mask_max_length,
                        min_block_bytes=min_block_bytes)
        out = jax.block_until_ready(out)
        assert jnp.allclose(out, ref, atol=1e-6, rtol=0.0), "mismatch vs reference"

    key = jax.random.PRNGKey(0)
    k1, k2, k3 = jax.random.split(key, 3)

    # Small NCHW spectrogram [B, C, F, T] — single full-time block, no padding.
    run_case(k1, B=2, C=4, F=16, T=16, mask_max_length=4, mask_max_masks=2, p=1.0)

    # Longer time axis — sparse multi-block path (t_blk=128, 2 blocks),
    # spill-aware candidate pruning + dedup, p<1 so some batches are inactive.
    run_case(k2, B=2, C=2, F=8, T=256, mask_max_length=16, mask_max_masks=2,
             p=0.5, min_block_bytes=1024)

    # Odd batch count, 3 time blocks, masks that can spill across boundaries.
    run_case(k3, B=3, C=2, F=8, T=384, mask_max_length=40, mask_max_masks=3,
             p=0.6, min_block_bytes=1024)

    print("KERNEL_OK")
</pallas_src>

<mosaic_0001>
module attributes {stable_mosaic.version = 11 : i64} {
  func.func @_masking_kernel(%arg0: i32, %arg1: i32, %arg2: memref<2xi32, #tpu.memory_space<smem>>, %arg3: memref<2xi32, #tpu.memory_space<smem>>, %arg4: memref<4xi32, #tpu.memory_space<smem>>, %arg5: memref<4xi32, #tpu.memory_space<smem>>, %arg6: memref<2xi32, #tpu.memory_space<smem>>, %arg7: memref<1x64x16xf32, #tpu.memory_space<vmem>>, %arg8: memref<1x64x16xf32, #tpu.memory_space<vmem>>) attributes {dimension_semantics = [#tpu.dimension_semantics<parallel>, #tpu.dimension_semantics<arbitrary>], iteration_bounds = array<i64: 2, 1>, scalar_prefetch = 5 : i64, scratch_operands = 0 : i64, tpu.core_type = #tpu.core_type<tc>, window_params = [{transform_indices = @transform_0, window_bounds = array<i64: 1, 64, 16>}, {transform_indices = @transform_1, window_bounds = array<i64: 1, 64, 16>}]} {
    %c1_i32 = arith.constant 1 : i32
    %0 = arith.muli %arg0, %c1_i32 : i32
    %1 = arith.addi %0, %arg1 : i32
    %2 = arith.index_cast %1 : i32 to index
    %3 = memref.load %arg6[%2] : memref<2xi32, #tpu.memory_space<smem>>
    %c16_i32 = arith.constant 16 : i32
    %4 = arith.muli %3, %c16_i32 : i32
    %5 = arith.index_cast %arg0 : i32 to index
    %6 = memref.load %arg2[%5] : memref<2xi32, #tpu.memory_space<smem>>
    %c0_i32 = arith.constant 0 : i32
    %7 = arith.cmpi sgt, %6, %c0_i32 : i32
    %8 = arith.index_cast %arg0 : i32 to index
    %9 = memref.load %arg3[%8] : memref<2xi32, #tpu.memory_space<smem>>
    %10 = tpu.iota {dimensions = array<i32: 1>} : vector<1x16xi32>
    %11 = vector.broadcast %4 : i32 to vector<1x16xi32>
    %12 = arith.addi %11, %10 : vector<1x16xi32>
    %false = arith.constant false
    %13 = vector.broadcast %false : i1 to vector<1x16xi1>
    %c2_i32 = arith.constant 2 : i32
    %14 = arith.muli %arg0, %c2_i32 : i32
    %c0_i32_0 = arith.constant 0 : i32
    %15 = arith.addi %14, %c0_i32_0 : i32
    %16 = arith.index_cast %15 : i32 to index
    %17 = memref.load %arg4[%16] : memref<4xi32, #tpu.memory_space<smem>>
    %c2_i32_1 = arith.constant 2 : i32
    %18 = arith.muli %arg0, %c2_i32_1 : i32
    %c0_i32_2 = arith.constant 0 : i32
    %19 = arith.addi %18, %c0_i32_2 : i32
    %20 = arith.index_cast %19 : i32 to index
    %21 = memref.load %arg5[%20] : memref<4xi32, #tpu.memory_space<smem>>
    %c0_i32_3 = arith.constant 0 : i32
    %22 = arith.cmpi sgt, %9, %c0_i32_3 : i32
    %23 = arith.andi %7, %22 : i1
    %c1073741823_i32 = arith.constant 1073741823 : i32
    %24 = arith.select %23, %17, %c1073741823_i32 : i32
    %25 = arith.addi %17, %21 : i32
    %c1073741823_i32_4 = arith.constant 1073741823 : i32
    %26 = arith.select %23, %25, %c1073741823_i32_4 : i32
    %27 = vector.broadcast %24 : i32 to vector<1x16xi32>
    %28 = arith.cmpi sge, %12, %27 : vector<1x16xi32>
    %29 = vector.broadcast %26 : i32 to vector<1x16xi32>
    %30 = arith.cmpi slt, %12, %29 : vector<1x16xi32>
    %31 = arith.andi %28, %30 : vector<1x16xi1>
    %32 = arith.ori %13, %31 : vector<1x16xi1>
    %c2_i32_5 = arith.constant 2 : i32
    %33 = arith.muli %arg0, %c2_i32_5 : i32
    %c1_i32_6 = arith.constant 1 : i32
    %34 = arith.addi %33, %c1_i32_6 : i32
    %35 = arith.index_cast %34 : i32 to index
    %36 = memref.load %arg4[%35] : memref<4xi32, #tpu.memory_space<smem>>
    %c2_i32_7 = arith.constant 2 : i32
    %37 = arith.muli %arg0, %c2_i32_7 : i32
    %c1_i32_8 = arith.constant 1 : i32
    %38 = arith.addi %37, %c1_i32_8 : i32
    %39 = arith.index_cast %38 : i32 to index
    %40 = memref.load %arg5[%39] : memref<4xi32, #tpu.memory_space<smem>>
    %c1_i32_9 = arith.constant 1 : i32
    %41 = arith.cmpi sgt, %9, %c1_i32_9 : i32
    %42 = arith.andi %7, %41 : i1
    %c1073741823_i32_10 = arith.constant 1073741823 : i32
    %43 = arith.select %42, %36, %c1073741823_i32_10 : i32
    %44 = arith.addi %36, %40 : i32
    %c1073741823_i32_11 = arith.constant 1073741823 : i32
    %45 = arith.select %42, %44, %c1073741823_i32_11 : i32
    %46 = vector.broadcast %43 : i32 to vector<1x16xi32>
    %47 = arith.cmpi sge, %12, %46 : vector<1x16xi32>
    %48 = vector.broadcast %45 : i32 to vector<1x16xi32>
    %49 = arith.cmpi slt, %12, %48 : vector<1x16xi32>
    %50 = arith.andi %47, %49 : vector<1x16xi1>
    %51 = arith.ori %32, %50 : vector<1x16xi1>
    %c0 = arith.constant 0 : index
    %c0_12 = arith.constant 0 : index
    %c0_13 = arith.constant 0 : index
    %52 = vector.load %arg7[%c0, %c0_12, %c0_13] : memref<1x64x16xf32, #tpu.memory_space<vmem>>, vector<1x64x16xf32>
    %53 = vector.shape_cast %52 : vector<1x64x16xf32> to vector<64x16xf32>
    %cst = arith.constant 0.000000e+00 : f32
    %54 = vector.shape_cast %51 : vector<1x16xi1> to vector<1x16xi1>
    %55 = vector.broadcast %54 : vector<1x16xi1> to vector<64x16xi1>
    %56 = vector.broadcast %cst : f32 to vector<64x16xf32>
    %57 = arith.select %55, %56, %53 : vector<64x16xi1>, vector<64x16xf32>
    %c0_14 = arith.constant 0 : index
    %c0_15 = arith.constant 0 : index
    %c0_16 = arith.constant 0 : index
    %58 = vector.load %arg8[%c0_14, %c0_15, %c0_16] : memref<1x64x16xf32, #tpu.memory_space<vmem>>, vector<1x64x16xf32>
    %59 = vector.shape_cast %58 : vector<1x64x16xf32> to vector<64x16xf32>
    %60 = vector.shape_cast %57 : vector<64x16xf32> to vector<1x64x16xf32>
    tpu.vector_store %arg8[%c0_14, %c0_15, %c0_16], %60 {strides = array<i32>} : memref<1x64x16xf32, #tpu.memory_space<vmem>>, vector<1x64x16xf32>,
    return
  }
  func.func @transform_0(%arg0: i32, %arg1: i32, %arg2: memref<2xi32, #tpu.memory_space<smem>>, %arg3: memref<2xi32, #tpu.memory_space<smem>>, %arg4: memref<4xi32, #tpu.memory_space<smem>>, %arg5: memref<4xi32, #tpu.memory_space<smem>>, %arg6: memref<2xi32, #tpu.memory_space<smem>>) -> (i32, i32, i32) {
    %c1_i32 = arith.constant 1 : i32
    %0 = arith.muli %arg0, %c1_i32 : i32
    %1 = arith.addi %0, %arg1 : i32
    %2 = arith.index_cast %1 : i32 to index
    %3 = memref.load %arg6[%2] : memref<2xi32, #tpu.memory_space<smem>>
    %c0_i32 = arith.constant 0 : i32
    %c0_i32_0 = arith.constant 0 : i32
    return %arg0, %c0_i32, %3 : i32, i32, i32
  }
  func.func @transform_1(%arg0: i32, %arg1: i32, %arg2: memref<2xi32, #tpu.memory_space<smem>>, %arg3: memref<2xi32, #tpu.memory_space<smem>>, %arg4: memref<4xi32, #tpu.memory_space<smem>>, %arg5: memref<4xi32, #tpu.memory_space<smem>>, %arg6: memref<2xi32, #tpu.memory_space<smem>>) -> (i32, i32, i32) {
    %c1_i32 = arith.constant 1 : i32
    %0 = arith.muli %arg0, %c1_i32 : i32
    %1 = arith.addi %0, %arg1 : i32
    %2 = arith.index_cast %1 : i32 to index
    %3 = memref.load %arg6[%2] : memref<2xi32, #tpu.memory_space<smem>>
    %c0_i32 = arith.constant 0 : i32
    %c0_i32_0 = arith.constant 0 : i32
    return %arg0, %c0_i32, %3 : i32, i32, i32
  }
}

</mosaic_0001>

<bundles_post_ra>
// kernel: custom_masking.1
= control target key start
LH: loop header
LB: loop body
LE: loop exit
PB: predicated region body
PF: predicated region fallthrough
CT: control target
= control target key end

     0   :  { %s997_s0 = inlined_call_operand.vmem [shape: s32[2], index: 0, kind: input, shape index: {}]   ;;  %s998_s5 = inlined_call_operand.hbm [shape: f32[2,64,16], index: 5, kind: input, shape index: {}, may-alias: {5,6}]   ;;  %s999_s6 = inlined_call_operand.hbm [shape: f32[2,64,16], index: 6, kind: output, shape index: {}, may-alias: {5,6}]   ;;  %s1000_s1 = inlined_call_operand.vmem [shape: s32[2], index: 1, kind: input, shape index: {}]   ;;  %s1001_s2 = inlined_call_operand.vmem [shape: s32[4], index: 2, kind: input, shape index: {}]   ;;  %s1002_s3 = inlined_call_operand.vmem [shape: s32[4], index: 3, kind: input, shape index: {}]   ;;  %s1003_s4 = inlined_call_operand.vmem [shape: s32[2], index: 4, kind: input, shape index: {}]  }
   0x1   :  { %s11_s23 = sshll.u32 %s997_s0, 4  ;;  %s15_s26 = sshll.u32 %s1000_s1, 4  ;;  %s12_s23 = int_to_ptr.vmem [resolvable:$true] %s11_s23  ;;  %s16_s26 = int_to_ptr.vmem [resolvable:$true] %s15_s26 }
   0x2   :  { %s483_s27 = scalar_lea.vmem %s12_s23, 16  ;;  %p488_p1 = scmp.lt.s32.totalorder %s12_s23, %s12_s23 }
   0x3   :  { %p484_p0 = scmp.ne.s32.totalorder %s12_s23, %s483_s27  ;;  %p489_p2 = scmp.lt.s32.totalorder %s483_s27, %s483_s27 }
   0x5   :  { %p490_p3 = por %p489_p2, %p488_p1 }
   0x7   :  { %p491_p4 = pnand %p490_p3, %p484_p0 }
   0x9   :  { %494 = shalt.err (!%p491_p4)  }
   0xa   :  { %s679_s28 = smov [#allocation3]   ;;  %s495_s29 = scalar_lea.vmem %s16_s26, 16 }
   0xb   :  { %14 = dma.vmem_to_smem %s12_s23, 16, %s679_s28, [#allocation2] }
   0xc   :  { %p496_p5 = scmp.ne.s32.totalorder %s16_s26, %s495_s29  ;;  %p500_p6 = scmp.lt.s32.totalorder %s16_s26, %s16_s26 }
   0xd   :  { %p501_p7 = scmp.lt.s32.totalorder %s495_s29, %s495_s29 }
   0xf   :  { %p502_p8 = por %p501_p7, %p500_p6 }
  0x11   :  { %p503_p9 = pnand %p502_p8, %p496_p5 }
  0x13   :  { %506 = shalt.err (!%p503_p9)  }
  0x14   :  { %s680_s0 = smov [#allocation4]   ;;  %s19_s7 = sshll.u32 %s1001_s2, 4  ;;  %s20_s7 = int_to_ptr.vmem [resolvable:$true] %s19_s7 }
  0x15   :  { %18 = dma.vmem_to_smem %s16_s26, 16, %s680_s0, [#allocation2] }
  0x16   :  { %s23_s10 = sshll.u32 %s1002_s3, 4  ;;  %s507_s11 = scalar_lea.vmem %s20_s7, 16  ;;  %s24_s10 = int_to_ptr.vmem [resolvable:$true] %s23_s10 }
  0x17   :  { %p508_p10 = scmp.ne.s32.totalorder %s20_s7, %s507_s11  ;;  %p512_p11 = scmp.lt.s32.totalorder %s20_s7, %s20_s7 }
  0x18   :  { %p513_p12 = scmp.lt.s32.totalorder %s507_s11, %s507_s11 }
  0x1a   :  { %p514_p13 = por %p513_p12, %p512_p11 }
  0x1c   :  { %p515_p0 = pnand %p514_p13, %p508_p10 }
  0x1e   :  { %518 = shalt.err (!%p515_p0)  }
  0x1f   :  { %s681_s12 = smov [#allocation5]   ;;  %s519_s13 = scalar_lea.vmem %s24_s10, 16 }
  0x20   :  { %22 = dma.vmem_to_smem %s20_s7, 16, %s681_s12, [#allocation2] }
  0x21   :  { %p520_p1 = scmp.ne.s32.totalorder %s24_s10, %s519_s13  ;;  %p524_p2 = scmp.lt.s32.totalorder %s24_s10, %s24_s10 }
  0x22   :  { %p525_p3 = scmp.lt.s32.totalorder %s519_s13, %s519_s13 }
  0x24   :  { %p526_p4 = por %p525_p3, %p524_p2 }
  0x26   :  { %p527_p5 = pnand %p526_p4, %p520_p1 }
  0x28   :  { %530 = shalt.err (!%p527_p5)  }
  0x29   :  { %s682_s2 = smov [#allocation6]   ;;  %s27_s15 = sshll.u32 %s1003_s4, 4  ;;  %s28_s15 = int_to_ptr.vmem [resolvable:$true] %s27_s15 }
  0x2a   :  { %26 = dma.vmem_to_smem %s24_s10, 16, %s682_s2, [#allocation2] }
  0x2b   :  { %s531_s16 = scalar_lea.vmem %s28_s15, 16  ;;  %p536_p7 = scmp.lt.s32.totalorder %s28_s15, %s28_s15 }
  0x2c   :  { %p532_p6 = scmp.ne.s32.totalorder %s28_s15, %s531_s16  ;;  %p537_p8 = scmp.lt.s32.totalorder %s531_s16, %s531_s16 }
  0x2e   :  { %p538_p9 = por %p537_p8, %p536_p7 }
  0x30   :  { %p539_p10 = pnand %p538_p9, %p532_p6 }
  0x32   :  { %542 = shalt.err (!%p539_p10)  }
  0x33   :  { %s683_s17 = smov [#allocation7]  }
  0x34   :  { %30 = dma.vmem_to_smem %s28_s15, 16, %s683_s17, [#allocation2] }
  0x35   :  { %633 = dma.done.wait [#allocation2], 80 }
  0x36   :  { %634 = vsyncadd [#allocation2], 4294967216 }
  0x37   :  { %32 = sfence }
  0x38   :  { %33 = vsyncpa [#allocation9], 0 }
  0x39   :  { %35 = vsyncpa [#allocation9 + $0x1], 0 }
  0x3a   :  { %36 = vsyncpa [#allocation10], 0 }
  0x3b   :  { %38 = vsyncpa [#allocation10 + $0x1], 0  ;;  %s740_s18 = smov 0   ;;  %s742_s4 = smov 0  }
  0x3c   :  { %s744_s19 = smov 0   ;;  %s746_s20 = smov 0  }
  0x3d   :  { %s748_s21 = smov 0   ;;  %s750_s22 = smov 0  }
  0x3e   :  { %s752_s23 = smov 0   ;;  %s754_s24 = smov 0  }
  0x3f   :  { %s756_s25 = smov 0  }
  0x40 LB: > { %s361_s26 = sadd.s32 4294967295, %s677_s25   ;;  %s362_s27 = sadd.s32 4294967294, %s677_s25   ;;  %s677_s25 = sphi %s756_s25, %s44_s25   ;;  %s673_s24 = sphi %s754_s24, %s1026_s24   ;;  %s669_s23 = sphi %s752_s23, %s1025_s23   ;;  %s665_s22 = sphi %s750_s22, %s1024_s22   ;;  %s661_s21 = sphi %s748_s21, %s1023_s21   ;;  %s657_s20 = sphi %s746_s20, %s1022_s20   ;;  %s653_s19 = sphi %s744_s19, %s1021_s19   ;;  %s649_s4 = sphi %s742_s4, %s1020_s4   ;;  %s645_s18 = sphi %s740_s18, %s1019_s18  }
  0x41   : > { %s56_s28 = sadd.s32 1, %s673_s24  ;;  %s61_s29 = sld [smem:[#allocation7 + %s673_s24]] }
  0x42   : > { %p58_p11 = scmp.ge.s32.totalorder %s56_s28, 2  ;;  %p76_p12 = scmp.ne.s32.totalorder %s665_s22, %s661_s21 }
  0x43   : > { %p77_p13 = scmp.eq.s32.totalorder %s677_s25, 0  ;;  %s69_s0 = sadd.s32 1, %s665_s22 }
  0x44   : > { %s1028_s28 = smov (%p58_p11, %s56_s28), 0  ;;  %p82_p0 = scmp.ne.s32.totalorder %s661_s21, %s657_s20 }
  0x45   : > { %s63_s1 = sld [smem:[#allocation7 + %s1028_s28]]  ;;  %p795_p1 = por %p77_p13, %p76_p12 }
  0x46   : > { %p83_p2 = scmp.eq.s32.totalorder %s361_s26, 0  ;;  %s93_s7 = sld [smem:[#allocation7 + %s673_s24]] }
  0x47   : > { %s64_s8 = ssub.s32 %s673_s24, %s1028_s28  ;;  %s95_s9 = sld [smem:[#allocation7 + %s1028_s28]] }
  0x48   : > { %p803_p3 = por %p83_p2, %p82_p0  ;;  %p111_p4 = scmp.ne.s32.totalorder %s653_s19, %s649_s4 }
  0x49   : > { %p112_p5 = scmp.eq.s32.totalorder %s361_s26, 1  ;;  %p117_p6 = scmp.ne.s32.totalorder %s649_s4, %s645_s18 }
  0x4a   : > { %s1007_s10 = scalar_select %p803_p3, 1, 0 }
  0x4b   : > { %p118_p7 = scmp.eq.s32.totalorder %s362_s27, 1  ;;  %s65_s11 = ssub.s32 %s61_s29, %s63_s1 }
  0x4c   : > { %p812_p9 = por %p112_p5, %p111_p4  ;;  %s66_s13 = sor.u32 %s65_s11, %s64_s8 }
  0x4d   : > { %p816_p10 = por %p118_p7, %p117_p6  ;;  %p67_p11 = scmp.eq.s32.totalorder %s66_s13, 0 }
  0x4e   : > { %s1008_s12 = scalar_select %p812_p9, 1, 0 }
  0x4f   : > { %s1009_s2 = scalar_select %p816_p10, 1, 0 }
  0x50   : > { %s97_s3 = ssub.s32 %s93_s7, %s95_s9  ;;  %s101_s15 = sadd.s32 1, %s653_s19 }
  0x51   : > { %s98_s14 = sor.u32 %s97_s3, %s64_s8  ;;  %s138_s17 = sand.u32 1, %s665_s22  }
  0x52   : > { %s822_s16 = scalar_select %p67_p11, %s665_s22, %s69_s0  }
  0x53   : > { %p99_p12 = scmp.eq.s32.totalorder %s98_s14, 0  ;;  %p400_p13 = scmp.lt.s32.totalorder %s677_s25, 2 }
  0x54   : > { %s365_s20 = sshll.u32 %s138_s17, 6  ;;  %p368_p2 = scmp.ge.s32.totalorder %s677_s25, 1 }
  0x55   : > { %s827_s26 = scalar_select %p99_p12, %s653_s19, %s101_s15  }
  0x56   : > { %s382_s27 = scalar_select %p795_p1, [#allocation7], [#allocation12] }
  0x57   : > { %s383_s29 = scalar_select %p795_p1, %s673_s24, 0 }
  0x58   : > { %s1030_s27 = smov (!%p400_p13, %s382_s27), [#allocation14]  ;;  %p836_p0 = pnand %p400_p13, %p795_p1 }
  0x59   : > { %s1032_s29 = smov (!%p400_p13, %s383_s29), 0  ;;  %s142_s7 = scalar_lea.vmem [#allocation8], %s365_s20 }
  0x5a   : > { %s144_s0 = sld [smem:[%s1030_s27 + %s1032_s29]]  ;;  %s152_s8 = sshll.u32 %s142_s7, 4  ;;  %s843_s8 = int_to_ptr.vmem [resolvable:$true] %s152_s8 }
  0x5b   : > { %s366_s9 = sshll.u32 %s673_s24, 3  ;;  %p160_p4 = scmp.lt.s32.totalorder %s677_s25, 3 }
  0x5c   : > { %s854_s20 = scalar_lea.sflag [#allocation9], %s138_s17  ;;  %p545_p6 = pneg %p836_p0 }
  0x5d   : > { %p845_p5 = pnand %p368_p2, %p160_p4 }
  0x5f   : > { %s1011_s11 = scalar_select %p845_p5, 1, 0 }
  0x60   : > { %s149_s13 = sadd.s32 %s366_s9, %s144_s0  ;;  %s548_s0 = scalar_lea.hbm %s998_s5, 2048 }
  0x61   : > { %s367_s3 = sshll.u32 %s149_s13, 7 }
  0x62   : > { %s852_s15 = scalar_lea.hbm %s998_s5, %s367_s3 }
  0x63   : > { %s543_s27 = scalar_lea.hbm %s852_s15, 1024  ;;  %p549_p12 = scmp.lt.s32.totalorder %s852_s15, %s998_s5 }
  0x64   : > { %p544_p1 = scmp.ne.s32.totalorder %s852_s15, %s543_s27  ;;  %p550_p13 = scmp.lt.s32.totalorder %s548_s0, %s543_s27 }
  0x66   : > { %p546_p7 = pnand %p545_p6, %p544_p1  ;;  %p551_p2 = por %p550_p13, %p549_p12 }
  0x68   : > { %p547_p11 = pneg %p546_p7 }
  0x6a   : > { %p552_p4 = pnand %p551_p2, %p547_p11 }
  0x6c   : > { %555 = shalt.err (!%p552_p4)
}
  0x6d   : > { %s556_s17 = scalar_lea.vmem %s843_s8, 1024  ;;  %s684_s3 = smov [#allocation8]  }
  0x6e   : > { %p557_p8 = scmp.ne.s32.totalorder %s843_s8, %s556_s17  ;;  %s561_s30 = sshll.u32 %s684_s3, 4  ;;  %s562_s30 = int_to_ptr.vmem [resolvable:$false] %s561_s30 }
  0x6f   : > { %s563_s14 = scalar_lea.vmem %s562_s30, 2048  ;;  %p564_p7 = scmp.lt.s32.totalorder %s843_s8, %s562_s30 }
  0x70   : > { %p559_p10 = pnand %p557_p8, %p545_p6  ;;  %p565_p9 = scmp.lt.s32.totalorder %s563_s14, %s556_s17 }
  0x72   : > { %p560_p1 = pneg %p559_p10  ;;  %p566_p3 = por %p565_p9, %p564_p7 }
  0x74   : > { %p567_p5 = pnand %p566_p3, %p560_p1 }
  0x76   : > { %570 = shalt.err (!%p567_p5)
}
  0x77   : > { %s685_s27 = smov 128   ;;  %s686_s29 = smov 8  }
  0x78   : > { %395 = dma.hbm_to_vmem [thread:$0]  (!%p836_p0), %s852_s15, 1024, %s843_s8, %s854_s20, %s685_s27, %s685_s27, %s686_s29  }
  0x79   : > { %p1012_p8 = scmp.ne.s32.totalorder %s1011_s11, 0 }
  0x7a   : > { %s166_s7 = sand.u32 (!%p1012_p8), 1, %s661_s21   ;;  %p1013_p3 = scmp.ne.s32.totalorder (!%p1012_p8), %s1007_s10, 0 }
  0x7b   : > { %164 = sbr.rel (%p1012_p8) target bundleno = 169 (0xa9), region = 24  ;;  %s369_s0 = sshll.u32 (!%p1012_p8), %s166_s7, 6 }
  0x7c   : > { %s167_s9 = scalar_lea.sflag (!%p1012_p8), [#allocation9], %s166_s7  ;;  %s878_s13 = scalar_lea.vmem (!%p1012_p8), [#allocation8], %s369_s0 }
  0x80   : > { %636 = dma.done.wait (%p1013_p3), %s167_s9, 1024  }
  0x81   : > { %638 = vsyncadd (%p1013_p3), %s167_s9, 4294966272  ;;  %s194_s1 = sld [smem:[#allocation7 + %s669_s23]]  ;;  %s372_s8 = sshll.u32 %s669_s23, 1  ;;  %v199_v0 = vlaneseq  ;;  %v232_v7 = vld [vmem:[%s878_s13] sm:$0xff]  ;;  %v233_v9 = vld [vmem:[%s878_s13 + $0x8] sm:$0xff]  ;;  %vm250_vm6 = vcmask 130048  }
  0x82   : > { %s196_s11 = sld [smem:[#allocation3 + %s669_s23]]  ;;  %s217_s17 = sadd.s32 1, %s372_s8  ;;  %v234_v10 = vld [vmem:[%s878_s13 + $0x10] sm:$0xff]  ;;  %v235_v11 = vld [vmem:[%s878_s13 + $0x18] sm:$0xff]  ;;  %v236_v12 = vld [vmem:[%s878_s13 + $0x20] sm:$0xff] }
  0x83   : > { %s198_s15 = sld [smem:[#allocation4 + %s669_s23]]  ;;  %v200_v1 = vand.u32 127, %v199_v0  ;;  %p1014_p5 = scmp.ne.s32.totalorder %s1008_s12, 0  ;;  %v237_v13 = vld [vmem:[%s878_s13 + $0x28] sm:$0xff]  ;;  %v238_v14 = vld [vmem:[%s878_s13 + $0x30] sm:$0xff]  ;;  %v239_v15 = vld [vmem:[%s878_s13 + $0x38] sm:$0xff] }
  0x84   : > { %s204_s20 = sld [smem:[#allocation5 + %s372_s8]]  ;;  %s186_s7 = sand.u32 1, %s649_s4  }
  0x85   : > { %s205_s3 = sld [smem:[#allocation6 + %s372_s8]]  ;;  %s370_s9 = sshll.u32 %s186_s7, 6 }
  0x86   : > { %s218_s14 = sld [smem:[#allocation5 + %s217_s17]] }
  0x87   : > { %s371_s30 = sshll.u32 %s194_s1, 4  ;;  %s219_s10 = sld [smem:[#allocation6 + %s217_s17]] }
  0x88   : > { %p197_p9 = scmp.gt.s32.totalorder %s196_s11, 0  ;;  %v201_v2 = vstv %s371_s30  ;;  %s378_s17 = sshll.u32 %s669_s23, 3 }
  0x89   : > { %p206_p10 = scmp.gt.s32.totalorder %s198_s15, 0  ;;  %p220_p0 = scmp.gt.s32.totalorder %s198_s15, 1  ;;  %v202_v3 = vadd.s32 %v201_v2, %v200_v1 }
  0x8a   : > { %s386_s27 = scalar_select %p1014_p5, [#allocation7], [#allocation13] }
  0x8b   : > { %p207_p6 = pnand %p206_p10, %p197_p9  ;;  %s210_s29 = sadd.s32 %s205_s3, %s204_s20 }
  0x8c   : > { %p221_p11 = pnand %p220_p0, %p197_p9  ;;  %s188_s15 = scalar_lea.vmem [#allocation11], %s370_s9 }
  0x8d   : > { %s1034_s20 = smov (%p207_p6, %s204_s20), 1073741823  ;;  %s1036_s29 = smov (%p207_p6, %s210_s29), 1073741823 }
  0x8e   : > { %v212_v4 = vstv %s1034_s20  ;;  %s375_s0 = scalar_select %p221_p11, 1073741823, %s218_s14  ;;  %v214_v5 = vstv %s1036_s29 }
  0x8f   : > { %vm213_vm0 = vcmp.ge.s32.totalorder %v202_v3, %v212_v4  ;;  %s224_s1 = sadd.s32 %s219_s10, %s218_s14  ;;  %vm215_vm1 = vcmp.lt.s32.totalorder %v202_v3, %v214_v5  ;;  %s276_s20 = sshll.u32 %s188_s15, 4  ;;  %s929_s20 = int_to_ptr.vmem [resolvable:$true] %s276_s20 }
  0x90   : > { %s1038_s1 = smov (%p221_p11, %s224_s1), 1073741823  ;;  %v226_v6 = vstv %s375_s0  ;;  %vm216_vm3 = vmand %vm213_vm0, %vm215_vm1  ;;  %s942_s10 = scalar_lea.sflag [#allocation10], %s186_s7 }
  0x91   : > { %vm227_vm2 = vcmp.ge.s32.totalorder %v202_v3, %v226_v6  ;;  %s387_s8 = scalar_select %p1014_p5, %s669_s23, 0  ;;  %v228_v8 = vstv %s1038_s1 }
  0x92   : > { %vm229_vm4 = vcmp.lt.s32.totalorder %v202_v3, %v228_v8  ;;  %s687_s29 = smov [#allocation11]  }
  0x93   : > { %s268_s11 = sld [smem:[%s386_s27 + %s387_s8]]  ;;  %vm230_vm5 = vmand %vm227_vm2, %vm229_vm4  ;;  %s571_s27 = scalar_lea.vmem %s929_s20, 1024 }
  0x94   : > { %vm904_vm7 = vmor %vm216_vm3, %vm230_vm5  ;;  %p572_p12 = scmp.ne.s32.totalorder %s929_s20, %s571_s27  ;;  %s575_s0 = sshll.u32 %s687_s29, 4  ;;  %s576_s0 = int_to_ptr.vmem [resolvable:$false] %s575_s0 }
  0x95   : > { %v242_v17 = vsel %vm904_vm7, 0.0, %v232_v7  ;;  %v243_v18 = vsel %vm904_vm7, 0.0, %v233_v9  ;;  %v244_v19 = vsel %vm904_vm7, 0.0, %v234_v10  ;;  %v245_v20 = vsel %vm904_vm7, 0.0, %v235_v11  ;;  %s577_s9 = scalar_lea.vmem %s576_s0, 2048  ;;  %p578_p4 = scmp.lt.s32.totalorder %s929_s20, %s576_s0 }
  0x96   : > { %251 = vst.msk [vmem:[%s188_s15] sm:$0xff] %vm250_vm6, %v242_v17  ;;  %252 = vst.msk [vmem:[%s188_s15 + $0x8] sm:$0xff] %vm250_vm6, %v243_v18  ;;  %v246_v21 = vsel %vm904_vm7, 0.0, %v236_v12  ;;  %v247_v22 = vsel %vm904_vm7, 0.0, %v237_v13  ;;  %v248_v23 = vsel %vm904_vm7, 0.0, %v238_v14  ;;  %v249_v24 = vsel %vm904_vm7, 0.0, %v239_v15  ;;  %p573_p13 = pnand %p572_p12, %p1014_p5  ;;  %p579_p1 = scmp.lt.s32.totalorder %s577_s9, %s571_s27 }
  0x97   : > { %253 = vst.msk [vmem:[%s188_s15 + $0x10] sm:$0xff] %vm250_vm6, %v244_v19  ;;  %254 = vst.msk [vmem:[%s188_s15 + $0x18] sm:$0xff] %vm250_vm6, %v245_v20 }
  0x98   : > { %255 = vst.msk [vmem:[%s188_s15 + $0x20] sm:$0xff] %vm250_vm6, %v246_v21  ;;  %256 = vst.msk [vmem:[%s188_s15 + $0x28] sm:$0xff] %vm250_vm6, %v247_v22  ;;  %p574_p2 = pneg %p573_p13  ;;  %p580_p7 = por %p579_p1, %p578_p4 }
  0x99   : > { %257 = vst.msk [vmem:[%s188_s15 + $0x30] sm:$0xff] %vm250_vm6, %v248_v23  ;;  %258 = vst.msk [vmem:[%s188_s15 + $0x38] sm:$0xff] %vm250_vm6, %v249_v24  ;;  %s273_s23 = sadd.s32 %s378_s17, %s268_s11 }
  0x9a   : > { %s379_s13 = sshll.u32 %s273_s23, 7  ;;  %p581_p8 = pnand %p580_p7, %p574_p2 }
  0x9b   : > { %s938_s14 = scalar_lea.hbm %s999_s6, %s379_s13 }
  0x9c   : > { %584 = shalt.err (!%p581_p8)
}
  0x9d   : > { %s585_s7 = scalar_lea.hbm %s938_s14, 1024  ;;  %s589_s11 = scalar_lea.hbm %s999_s6, 2048 }
  0x9e   : > { %p586_p3 = scmp.ne.s32.totalorder %s938_s14, %s585_s7  ;;  %p590_p0 = scmp.lt.s32.totalorder %s938_s14, %s999_s6 }
  0x9f   : > { %p591_p6 = scmp.lt.s32.totalorder %s589_s11, %s585_s7 }
  0xa0   : > { %p587_p9 = pnand %p586_p3, %p1014_p5 }
  0xa1   : > { %p592_p11 = por %p591_p6, %p590_p0 }
  0xa2   : > { %p588_p10 = pneg %p587_p9 }
  0xa4   : > { %p593_p12 = pnand %p592_p11, %p588_p10 }
  0xa6   : > { %596 = shalt.err (!%p593_p12)
}
  0xa7   : > { %s688_s23 = smov 128   ;;  %s689_s13 = smov 8  }
  0xa8   : > { %388 = dma.vmem_to_hbm [thread:$0]  (%p1014_p5), %s929_s20, 1024, %s938_s14, %s942_s10, %s688_s23, %s688_s23, %s689_s13  }
  0xa9 PF: > { %s291_s3 = sand.u32 1, %s645_s18   ;;  %p1017_p13 = scmp.ne.s32.totalorder %s1009_s2, 0 }
  0xaa   : > { %p1018_p2 = scmp.ge.s32.totalorder %s677_s25, 2  ;;  %s292_s30 = scalar_lea.sflag [#allocation10], %s291_s3 }
  0xac   : > { %p397_p4 = pnand %p1018_p2, %p1017_p13 }
  0xae   : > { %p398_p1 = pneg %p397_p4 }
  0xb0   : > { %640 = dma.done.wait (%p398_p1), %s292_s30, 1024  }
  0xb1   : > { %642 = vsyncadd (%p398_p1), %s292_s30, 4294966272  ;;  %s44_s25 = sadd.s32 1, %s677_s25   ;;  %s1019_s18 = smov %s649_s4 }
  0xb2   : > { %p41_p7 = scmp.ge.s32.totalorder %s44_s25, 4   ;;  %s1020_s4 = smov %s653_s19 }
  0xb3   : > { %s1021_s19 = smov %s827_s26  ;;  %s1022_s20 = smov %s661_s21 }
  0xb4   : > { %s1023_s21 = smov %s665_s22  ;;  %s1024_s22 = smov %s822_s16 }
  0xb5   : > { %s1025_s23 = smov %s673_s24  ;;  %s1026_s24 = smov %s1028_s28 }
  0xb6   :  { %43 = sbr.rel (!%p41_p7) target bundleno = 64 (0x40), region = 69 }
  0xbb   :  { %297 = vsyncpa [#allocation9], 1 }
  0xbc   :  { %299 = vsyncpa [#allocation9 + $0x1], 1 }
  0xbd   :  { %300 = vsyncpa [#allocation10], 1 }
  0xbe   :  { %302 = vsyncpa [#allocation10 + $0x1], 1 }

</bundles_post_ra>
